<compile_context>
chip_gen: v5e
topology: v5e:2x2
jax: 0.10.0
libtpu: 0.0.40
codegen_flags: <defaults>
</compile_context>

<pallas_src>
import jax
import jax.numpy as jnp
from jax.experimental import pallas as pl
from jax.experimental.pallas import tpu as pltpu

# Target bytes for one input tile. Double-buffered in+out tiles => ~4x this.
_TARGET_TILE_BYTES = 2 * 1024 * 1024
# Lane width used for the scalar-beta (pure elementwise) path: a large
# multiple of 128 -> unmasked, lane-dense vector stores.
_FLAT_LANES = 512


def _sigmoid_f32(z):
    # exp sits on the EUP; pl.reciprocal keeps the recip off the VALU where
    # the backend can. approx=False: precision is free for a mem-bound kernel.
    return pl.reciprocal(1.0 + jnp.exp(-z), approx=False)


# ---------------------------------------------------------------------------
# Kernels
# ---------------------------------------------------------------------------
def _swish_scalar_beta_kernel(beta_ref, x_ref, o_ref):
    """beta_ref: (1,) scalar in SMEM; x_ref/o_ref: (tm, L) lane-dense tiles."""
    b = beta_ref[0].astype(jnp.float32)
    x = x_ref[...].astype(jnp.float32)
    o_ref[...] = (x * _sigmoid_f32(b * x)).astype(o_ref.dtype)


def _swish_col_beta_kernel(x_ref, beta_ref, o_ref):
    """x_ref/o_ref: (tm, D); beta_ref: (1, D) resident block (per-column)."""
    x = x_ref[...].astype(jnp.float32)
    b = beta_ref[...].astype(jnp.float32)                 # (1, D) broadcast
    o_ref[...] = (x * _sigmoid_f32(b * x)).astype(o_ref.dtype)


def _swish_chan_beta_kernel(x_ref, beta_ref, o_ref):
    """x_ref/o_ref: (bn, C, bs); beta_ref: (C, 1) resident block (per-channel)."""
    x = x_ref[...].astype(jnp.float32)
    b = beta_ref[...].astype(jnp.float32)[None, :, :]     # (1, C, 1) broadcast
    o_ref[...] = (x * _sigmoid_f32(b * x)).astype(o_ref.dtype)


# ---------------------------------------------------------------------------
# Wrappers
# ---------------------------------------------------------------------------
def _row_tile(rows, row_bytes):
    """Largest row tile: multiple of 8 sublanes, ~_TARGET_TILE_BYTES, <= rows.

    Note: if a single row exceeds the budget (huge last dim) this clamps to
    8 rows, which may exceed the VMEM budget only for pathological shapes.
    """
    tm = max(8, (_TARGET_TILE_BYTES // max(row_bytes, 1)) // 8 * 8)
    return min(tm, rows)


def _swish_scalar_beta(x, beta):
    """beta.size == 1: purely elementwise. Flatten to a lane-dense 2D view."""
    orig_shape = x.shape
    total = x.size
    flat = x.reshape(-1)
    L = _FLAT_LANES
    rows = pl.cdiv(total, L)
    pad = rows * L - total
    if pad:
        flat = jnp.pad(flat, (0, pad))
    x2 = flat.reshape(rows, L)

    tm = _row_tile(rows, L * x2.dtype.itemsize)
    out2 = pl.pallas_call(
        _swish_scalar_beta_kernel,
        out_shape=jax.ShapeDtypeStruct((rows, L), x2.dtype),
        grid=(pl.cdiv(rows, tm),),
        in_specs=[
            pl.BlockSpec(memory_space=pltpu.MemorySpace.SMEM),  # scalar beta
            pl.BlockSpec((tm, L), lambda i: (i, 0)),
        ],
        out_specs=pl.BlockSpec((tm, L), lambda i: (i, 0)),
        compiler_params=pltpu.CompilerParams(
            dimension_semantics=("parallel",)),
    )(beta.reshape(1).astype(x.dtype), x2)

    out = out2.reshape(-1)
    if pad:
        out = out[:total]
    return out.reshape(orig_shape)


def _swish_2d_col_beta(x, beta):
    """x: (N, D), beta: (D,). Per-column beta via a resident (1, D) block."""
    N, D = x.shape
    tm = _row_tile(N, D * x.dtype.itemsize)
    beta_row = beta.reshape(1, D).astype(x.dtype)
    return pl.pallas_call(
        _swish_col_beta_kernel,
        out_shape=jax.ShapeDtypeStruct((N, D), x.dtype),
        grid=(pl.cdiv(N, tm),),
        in_specs=[
            pl.BlockSpec((tm, D), lambda i: (i, 0)),
            pl.BlockSpec((1, D), lambda i: (0, 0)),   # resident across steps
        ],
        out_specs=pl.BlockSpec((tm, D), lambda i: (i, 0)),
        compiler_params=pltpu.CompilerParams(
            dimension_semantics=("parallel",)),
    )(x, beta_row)


def _swish_4d_chan_beta(x, beta):
    """x: (N, C, H, W) NCHW, beta: (C,). Per-channel beta, resident (C,1) block."""
    N, C, H, W = x.shape
    HW = H * W
    x3 = x.reshape(N, C, HW)          # contiguous reshape -> free
    dsize = x.dtype.itemsize
    slab = C * HW * dsize             # bytes of one batch element

    if slab <= _TARGET_TILE_BYTES:
        # Whole (C, H*W) slab per batch element; stack batches up to budget.
        bs = HW
        bn = min(N, max(1, _TARGET_TILE_BYTES // slab))
    else:
        # One batch element per step; tile spatial in multiples of 128 lanes.
        bn = 1
        if HW >= 128:
            bs = min(HW, max(128, (_TARGET_TILE_BYTES // (C * dsize)) // 128 * 128))
        else:
            bs = HW  # tiny spatial extent: full dim (masked lanes unavoidable)

    grid = (pl.cdiv(N, bn), pl.cdiv(HW, bs))
    beta_col = jnp.broadcast_to(beta.reshape(-1), (C,)).astype(x.dtype).reshape(C, 1)

    out3 = pl.pallas_call(
        _swish_chan_beta_kernel,
        out_shape=jax.ShapeDtypeStruct((N, C, HW), x.dtype),
        grid=grid,
        in_specs=[
            pl.BlockSpec((bn, C, bs), lambda i, j: (i, 0, j)),
            pl.BlockSpec((C, 1), lambda i, j: (0, 0)),   # resident across steps
        ],
        out_specs=pl.BlockSpec((bn, C, bs), lambda i, j: (i, 0, j)),
        compiler_params=pltpu.CompilerParams(
            dimension_semantics=("parallel", "parallel")),
    )(x3, beta_col)
    return out3.reshape(N, C, H, W)


def swish(x, beta):
    """Pallas-backed Swish matching the PyTorch module's forward."""
    beta = jnp.asarray(beta)
    if beta.size == 1:
        # Default Swish(): beta = ones((1,)) -> pure elementwise scalar op.
        return _swish_scalar_beta(x, beta)
    if x.ndim == 2:
        return _swish_2d_col_beta(x, beta)
    if x.ndim == 4:
        return _swish_4d_chan_beta(x, beta)
    raise ValueError(f"unsupported rank {x.ndim}")


def _swish_ref(x, beta):
    """Pure-JAX reference (mirrors the PyTorch forward exactly)."""
    if x.ndim == 2:
        b = beta.reshape(1, -1)
    else:
        b = beta.reshape(1, -1, 1, 1)
    return x * jax.nn.sigmoid(b * x)


if __name__ == "__main__":
    key = jax.random.PRNGKey(0)
    k1, k2, k3, k4 = jax.random.split(key, 4)

    # ---- 4D case: Swish(dim=C) with NCHW input ----
    N, C, H, W = 2, 4, 16, 16
    x4 = jax.random.normal(k1, (N, C, H, W), dtype=jnp.float32)
    beta4 = jnp.ones((C,), dtype=jnp.float32)            # module init (ones)
    out4 = jax.block_until_ready(swish(x4, beta4))
    ref4 = _swish_ref(x4, beta4)
    assert out4.shape == (N, C, H, W) and out4.dtype == x4.dtype
    assert jnp.allclose(out4, ref4, atol=1e-5, rtol=1e-5)

    # 4D again with a non-trivial per-channel beta (as if after training).
    beta4b = 0.5 + jax.random.uniform(k3, (C,), dtype=jnp.float32)
    out4b = jax.block_until_ready(swish(x4, beta4b))
    assert jnp.allclose(out4b, _swish_ref(x4, beta4b), atol=1e-5, rtol=1e-5)

    # ---- 2D case: default Swish() (non-learnable beta = ones((1,))) ----
    Nb, D = 2, 32
    x2 = jax.random.normal(k2, (Nb, D), dtype=jnp.float32)
    beta2 = jnp.ones((1,), dtype=jnp.float32)
    out2 = jax.block_until_ready(swish(x2, beta2))
    ref2 = _swish_ref(x2, beta2)
    assert out2.shape == (Nb, D) and out2.dtype == x2.dtype
    assert jnp.allclose(out2, ref2, atol=1e-5, rtol=1e-5)

    # ---- 2D case: Swish(dim=D) -> per-column learnable beta ----
    beta2d = 0.5 + jax.random.uniform(k4, (D,), dtype=jnp.float32)
    out2d = jax.block_until_ready(swish(x2, beta2d))
    assert jnp.allclose(out2d, _swish_ref(x2, beta2d), atol=1e-5, rtol=1e-5)

    print("KERNEL_OK")
</pallas_src>

<mosaic_0001>
module attributes {stable_mosaic.version = 11 : i64} {
  func.func @_swish_chan_beta_kernel(%arg0: i32, %arg1: i32, %arg2: memref<2x4x256xf32, #tpu.memory_space<vmem>>, %arg3: memref<4x1xf32, #tpu.memory_space<vmem>>, %arg4: memref<2x4x256xf32, #tpu.memory_space<vmem>>) attributes {dimension_semantics = [#tpu.dimension_semantics<parallel>, #tpu.dimension_semantics<parallel>], iteration_bounds = array<i64: 1, 1>, scalar_prefetch = 0 : i64, scratch_operands = 0 : i64, tpu.core_type = #tpu.core_type<tc>, window_params = [{transform_indices = @transform_0, window_bounds = array<i64: 2, 4, 256>}, {pipeline_mode = #tpu.pipeline_mode<synchronous>, transform_indices = @transform_1, window_bounds = array<i64: 4, 1>}, {transform_indices = @transform_2, window_bounds = array<i64: 2, 4, 256>}]} {
    %c0 = arith.constant 0 : index
    %c0_0 = arith.constant 0 : index
    %c0_1 = arith.constant 0 : index
    %0 = vector.load %arg2[%c0, %c0_0, %c0_1] : memref<2x4x256xf32, #tpu.memory_space<vmem>>, vector<2x4x256xf32>
    %c0_2 = arith.constant 0 : index
    %c0_3 = arith.constant 0 : index
    %1 = vector.load %arg3[%c0_2, %c0_3] : memref<4x1xf32, #tpu.memory_space<vmem>>, vector<4x1xf32>
    %2 = vector.shape_cast %1 : vector<4x1xf32> to vector<1x4x1xf32>
    %3 = vector.broadcast %2 : vector<1x4x1xf32> to vector<2x4x256xf32>
    %4 = arith.mulf %3, %0 : vector<2x4x256xf32>
    %cst = arith.constant 0.000000e+00 : f32
    %5 = vector.broadcast %cst : f32 to vector<2x4x256xf32>
    %6 = arith.subf %5, %4 : vector<2x4x256xf32>
    %7 = math.exp %6 : vector<2x4x256xf32>
    %cst_4 = arith.constant 1.000000e+00 : f32
    %8 = vector.broadcast %cst_4 : f32 to vector<2x4x256xf32>
    %9 = arith.addf %8, %7 : vector<2x4x256xf32>
    %10 = tpu.reciprocal %9 : vector<2x4x256xf32> -> vector<2x4x256xf32>
    %11 = arith.mulf %0, %10 : vector<2x4x256xf32>
    %c0_5 = arith.constant 0 : index
    %c0_6 = arith.constant 0 : index
    %c0_7 = arith.constant 0 : index
    %12 = vector.load %arg4[%c0_5, %c0_6, %c0_7] : memref<2x4x256xf32, #tpu.memory_space<vmem>>, vector<2x4x256xf32>
    tpu.vector_store %arg4[%c0_5, %c0_6, %c0_7], %11 {strides = array<i32>} : memref<2x4x256xf32, #tpu.memory_space<vmem>>, vector<2x4x256xf32>,
    return
  }
  func.func @transform_0(%arg0: i32, %arg1: i32) -> (i32, i32, i32) {
    %c0_i32 = arith.constant 0 : i32
    %c0_i32_0 = arith.constant 0 : i32
    return %arg0, %c0_i32, %arg1 : i32, i32, i32
  }
  func.func @transform_1(%arg0: i32, %arg1: i32) -> (i32, i32) {
    %c0_i32 = arith.constant 0 : i32
    %c0_i32_0 = arith.constant 0 : i32
    %c0_i32_1 = arith.constant 0 : i32
    return %c0_i32, %c0_i32_0 : i32, i32
  }
  func.func @transform_2(%arg0: i32, %arg1: i32) -> (i32, i32, i32) {
    %c0_i32 = arith.constant 0 : i32
    %c0_i32_0 = arith.constant 0 : i32
    return %arg0, %c0_i32, %arg1 : i32, i32, i32
  }
}

</mosaic_0001>

<bundles_post_ra>
// kernel: tpu_custom_call.1
= control target key start
LH: loop header
LB: loop body
LE: loop exit
PB: predicated region body
PF: predicated region fallthrough
CT: control target
= control target key end

     0   :  { %7 = vsyncpa [#allocation3], 0  ;;  %s302_s0 = inlined_call_operand.hbm [shape: f32[2,4,256], index: 0, kind: input, shape index: {}]   ;;  %s303_s1 = inlined_call_operand.vmem [shape: f32[4,1], index: 1, kind: input, shape index: {}]   ;;  %s304_s2 = inlined_call_operand.hbm [shape: f32[2,4,256], index: 2, kind: output, shape index: {}]  }
   0x1   :  { %8 = vsyncpa [#allocation4], 0  ;;  %s13_s11 = sshll.u32 %s302_s0, 4  ;;  %s233_s12 = smov [#allocation2]   ;;  %s14_s11 = int_to_ptr.hbm [resolvable:$true] %s13_s11 }
   0x2   :  { %s15_s13 = sshll.u32 %s233_s12, 4  ;;  %s234_s14 = smov 128   ;;  %s16_s13 = int_to_ptr.vmem [resolvable:$true] %s15_s13 }
   0x3   :  { %s235_s15 = smov 8  }
   0x4   :  { %21 = dma.hbm_to_vmem [thread:$0]  %s14_s11, 256, %s16_s13, [#allocation3], %s234_s14, %s234_s14, %s235_s15  }
   0x5   :  { %229 = dma.done.wait [#allocation3], 256  }
   0x6   :  { %230 = vsyncadd [#allocation3], 4294967040  ;;  %v236_v0 = vmov 0   ;;  %v30_v1 = vld [vmem:[%s303_s1] sm:$0xf]  ;;  %v262_v2 = vld [vmem:[#allocation2] sm:$0xff] }
   0x7   :  { %164 = vset.pattern.permute.xlu0 %v236_v0  ;;  %v264_v3 = vld [vmem:[#allocation2 + $0x8] sm:$0xff]  ;;  %38 = vst [vmem:[#allocation1] ss:$2 sm:$0xff] %v262_v2  ;;  %vm131_vm2 = vcmask 1043456   ;;  %s237_s0 = smov [#allocation5]   ;;  %s146_s20 = sshll.u32 %s304_s2, 4  ;;  %s147_s20 = int_to_ptr.hbm [resolvable:$true] %s146_s20 }
   0x8   :  { %33 = vperm.xlu0 %164, %v30_v1   ;;  %42 = vst [vmem:[#allocation1 + $0x10] ss:$2 sm:$0xff] %v264_v3  ;;  %s144_s1 = sshll.u32 %s237_s0, 4  ;;  %s145_s1 = int_to_ptr.vmem [resolvable:$true] %s144_s1 }
   0xe   :  { %v39_v4 = vld.sshfl [vmem:[#allocation1] sm:$0xff pattern:$0x75316420]  ;;  %v40_v5 = vld.sshfl [vmem:[#allocation1 + $0x8] sm:$0xff pattern:$0x75316420] }
   0xf   :  { %v43_v6 = vld.sshfl [vmem:[#allocation1 + $0x10] sm:$0xff pattern:$0x75316420]  ;;  %v44_v7 = vld.sshfl [vmem:[#allocation1 + $0x18] sm:$0xff pattern:$0x75316420] }
  0x7a   :  { %v34_v8 = vpop.permute.xlu0 %33 }
  0x7b   :  { %v49_v9 = vmul.f32 %v39_v4, %v34_v8  ;;  %v50_v10 = vmul.f32 %v40_v5, %v34_v8  ;;  %v51_v11 = vmul.f32 %v43_v6, %v34_v8  ;;  %v52_v12 = vmul.f32 %v44_v7, %v34_v8 }
  0x7d   :  { %v53_v13 = vsub.f32 0.0, %v49_v9  ;;  %v54_v14 = vsub.f32 0.0, %v50_v10  ;;  %v55_v15 = vsub.f32 0.0, %v51_v11  ;;  %v56_v16 = vsub.f32 0.0, %v52_v12 }
  0x7f   :  { %v57_v17 = vmul.f32 1.442695, %v53_v13  ;;  %v59_v18 = vmul.f32 1.442695, %v54_v14  ;;  %v61_v19 = vmul.f32 1.442695, %v55_v15 }
  0x80   :  { %v63_v20 = vmul.f32 1.442695, %v56_v16 }
  0x81   :  { %165 = vpow2.f32 %v57_v17 }
  0x82   :  { %167 = vpow2.f32 %v59_v18 }
  0x83   :  { %169 = vpow2.f32 %v61_v19 }
  0x84   :  { %171 = vpow2.f32 %v63_v20 }
  0x87   :  { %v166_v21 = vpop.eup %165 }
  0x88   :  { %v168_v22 = vpop.eup %167  ;;  %v65_v23 = vadd.f32 1.0, %v166_v21 }
  0x89   :  { %v170_v24 = vpop.eup %169  ;;  %v66_v25 = vadd.f32 1.0, %v168_v22 }
  0x8a   :  { %v172_v26 = vpop.eup %171  ;;  %v268_v27 = vadd.f32 1.0, %v170_v24  ;;  %173 = vrcp.f32 %v65_v23  ;;  %vm74_vm0 = vweird.f32 %v65_v23  ;;  %v78_v34 = vand.u32 2147483647, %v65_v23 }
  0x8b   :  { %v68_v28 = vadd.f32 1.0, %v172_v26  ;;  %175 = vrcp.f32 %v66_v25  ;;  %v80_v38 = vand.u32 2147483648, %v65_v23  ;;  %vm88_vm1 = vweird.f32 %v66_v25 }
  0x8c   :  { %177 = vrcp.f32 %v268_v27  ;;  %v92_v41 = vand.u32 2147483647, %v66_v25  ;;  %v94_v42 = vand.u32 2147483648, %v66_v25  ;;  %vm102_vm4 = vweird.f32 %v268_v27 }
  0x8d   :  { %179 = vrcp.f32 %v68_v28  ;;  %v106_v47 = vand.u32 2147483647, %v268_v27  ;;  %v122_v50 = vand.u32 2147483648, %v68_v28  ;;  %v120_v54 = vand.u32 2147483647, %v68_v28 }
  0x8e   :  { %vm93_vm10 = vcmp.eq.f32.partialorder %v92_v41, 8.507059e+37  ;;  %v95_v55 = vor.u32 1.1754944e-38, %v94_v42  ;;  %v108_v57 = vand.u32 2147483648, %v268_v27  ;;  %vm116_vm12 = vweird.f32 %v68_v28 }
  0x8f   :  { %vm79_vm13 = vcmp.eq.f32.partialorder %v78_v34, 8.507059e+37  ;;  %v81_v62 = vor.u32 1.1754944e-38, %v80_v38  ;;  %v123_v0 = vor.u32 1.1754944e-38, %v122_v50  ;;  %vm121_vm15 = vcmp.eq.f32.partialorder %v120_v54, 8.507059e+37 }
  0x90   :  { %v174_v29 = vpop.eup %173  ;;  %v109_v7 = vor.u32 1.1754944e-38, %v108_v57 }
  0x91   :  { %v176_v30 = vpop.eup %175  ;;  %v70_v31 = vmul.f32 %v174_v29, %v65_v23  ;;  %vm75_vm3 = vweird.f32 %v174_v29 }
  0x92   :  { %v178_v32 = vpop.eup %177  ;;  %v84_v33 = vmul.f32 %v176_v30, %v66_v25  ;;  %vm89_vm5 = vweird.f32 %v176_v30  ;;  %vm275_vm7 = vmor %vm74_vm0, %vm75_vm3  ;;  %vm107_vm0 = vcmp.eq.f32.partialorder %v106_v47, 8.507059e+37 }
  0x93   :  { %v180_v35 = vpop.eup %179  ;;  %v71_v36 = vsub.f32 1.0, %v70_v31  ;;  %v98_v37 = vmul.f32 %v178_v32, %v268_v27  ;;  %vm103_vm6 = vweird.f32 %v178_v32  ;;  %vm90_vm9 = vmor %vm88_vm1, %vm89_vm5 }
  0x94   :  { %v85_v39 = vsub.f32 1.0, %v84_v33  ;;  %v112_v40 = vmul.f32 %v180_v35, %v68_v28  ;;  %vm117_vm8 = vweird.f32 %v180_v35  ;;  %vm285_vm11 = vmor %vm102_vm4, %vm103_vm6 }
  0x95   :  { %v99_v43 = vsub.f32 1.0, %v98_v37  ;;  %v72_v44 = vmul.f32 %v174_v29, %v71_v36  ;;  %vm118_vm14 = vmor %vm116_vm12, %vm117_vm8 }
  0x96   :  { %v86_v45 = vmul.f32 %v176_v30, %v85_v39  ;;  %v113_v46 = vsub.f32 1.0, %v112_v40 }
  0x97   :  { %v73_v48 = vadd.f32 %v174_v29, %v72_v44  ;;  %v100_v49 = vmul.f32 %v178_v32, %v99_v43 }
  0x98   :  { %v114_v51 = vmul.f32 %v180_v35, %v113_v46  ;;  %v87_v53 = vadd.f32 %v176_v30, %v86_v45 }
  0x99   :  { %v101_v56 = vadd.f32 %v178_v32, %v100_v49  ;;  %v77_v58 = vsel %vm275_vm7, %v174_v29, %v73_v48 }
  0x9a   :  { %v91_v59 = vsel %vm90_vm9, %v176_v30, %v87_v53  ;;  %v115_v61 = vadd.f32 %v180_v35, %v114_v51  ;;  %v82_v6 = vsel %vm79_vm13, %v81_v62, %v77_v58 }
  0x9b   :  { %v96_v63 = vsel %vm93_vm10, %v95_v55, %v91_v59  ;;  %v105_v1 = vsel %vm285_vm11, %v178_v32, %v101_v56 }
  0x9c   :  { %v119_v4 = vsel %vm118_vm14, %v180_v35, %v115_v61  ;;  %v129_v5 = vrot.slane %v96_v63, 4  ;;  %v110_v11 = vsel %vm107_vm0, %v109_v7, %v105_v1 }
  0x9d   :  { %v124_v8 = vsel %vm121_vm15, %v123_v0, %v119_v4 }
  0x9e   :  { %v130_v9 = vrot.slane %v124_v8, 4  ;;  %v132_v10 = vsel %vm131_vm2, %v82_v6, %v129_v5 }
  0x9f   :  { %v136_v12 = vmul.f32 %v132_v10, %v262_v2 }
  0xa0   :  { %v133_v13 = vsel %vm131_vm2, %v110_v11, %v130_v9 }
  0xa1   :  { %v137_v14 = vmul.f32 %v133_v13, %v264_v3  ;;  %138 = vst [vmem:[#allocation5] sm:$0xff] %v136_v12 }
  0xa3   :  { %139 = vst [vmem:[#allocation5 + $0x8] sm:$0xff] %v137_v14 }
  0xa4   :  { %152 = dma.vmem_to_hbm [thread:$0]  %s145_s1, 256, %s147_s20, [#allocation4], %s234_s14, %s234_s14, %s235_s15  }
  0xa5   :  { %231 = dma.done.wait [#allocation4], 256  }
  0xa6   :  { %232 = vsyncadd [#allocation4], 4294967040 }
  0xa7   :  { %157 = vsyncpa [#allocation3], 1 }
  0xa8   :  { %158 = vsyncpa [#allocation4], 1 }

</bundles_post_ra>
